<compile_context>
chip_gen: v7x
topology: tpu7x:2x2x1
jax: 0.10.0
libtpu: 0.0.40
codegen_flags: <defaults>
</compile_context>

<pallas_src>
import jax
import jax.numpy as jnp
from jax.experimental import pallas as pl
from jax.experimental.pallas import tpu as pltpu


# ---------------------------------------------------------------------------
# Pallas kernels: fused (im2col-matmul) conv + folded-BN bias (+ residual)(+ReLU)
# ---------------------------------------------------------------------------
def _make_kernel(apply_relu: bool, add_shortcut: bool):
    if add_shortcut:
        def kernel(patch_ref, w_ref, bias_ref, short_ref, out_ref):
            acc = jnp.dot(patch_ref[...], w_ref[...],
                          preferred_element_type=jnp.float32)     # bf16 MXU, f32 acc
            y = acc + bias_ref[...]                                # folded BN bias
            y = y + short_ref[...].astype(jnp.float32)             # residual add
            if apply_relu:
                y = jnp.maximum(y, 0.0)
            out_ref[...] = y.astype(out_ref.dtype)
    else:
        def kernel(patch_ref, w_ref, bias_ref, out_ref):
            acc = jnp.dot(patch_ref[...], w_ref[...],
                          preferred_element_type=jnp.float32)
            y = acc + bias_ref[...]
            if apply_relu:
                y = jnp.maximum(y, 0.0)
            out_ref[...] = y.astype(out_ref.dtype)
    return kernel


def _round_up(x, m):
    return (x + m - 1) // m * m


def _pad2d(a, rows, cols):
    return jnp.pad(a, ((0, rows - a.shape[0]), (0, cols - a.shape[1])))


def _choose_tm(M, K_pad, C_pad, has_shortcut,
               vmem_budget=40 * 1024 * 1024):
    """Pick a fixed row tile (multiple of 128) that fits the VMEM budget.

    Budget counts: double-buffered bf16 patch stream, resident bf16 weight,
    f32 bias, double-buffered bf16/f32 output and (optional) bf16 shortcut.
    40 MiB keeps headroom under v7x's 64 MiB physical VMEM per TensorCore.
    """
    for tm in (512, 384, 256, 128):
        use = (2 * tm * K_pad * 2          # patch blocks (bf16, double-buffered)
               + K_pad * C_pad * 2         # resident weight block (bf16)
               + C_pad * 4                 # bias
               + 2 * tm * C_pad * 4        # output blocks (worst case f32)
               + (2 * tm * C_pad * 2 if has_shortcut else 0))
        if use <= vmem_budget:
            return min(tm, _round_up(M, 128))
    return 128


def conv_bn_matmul(patches, w2d, bias, shortcut=None, relu=False,
                   out_dtype=jnp.float32):
    """Fused conv (as im2col matmul) + folded-BN bias (+ residual) (+ ReLU).

    patches : (M, K)      — im2col patch matrix (any float dtype; cast to bf16)
    w2d     : (K, Cout)   — weights with the BN scale already folded in
    bias    : (Cout,)     — folded BN bias (f32)
    shortcut: (M, Cout)   — optional residual input
    Returns (M, Cout) in out_dtype.
    """
    M, K = patches.shape
    Cout = w2d.shape[1]

    K_pad = _round_up(K, 128)            # lane-aligned reduction dim
    C_pad = _round_up(Cout, 128)         # lane-dense output (no masked stores)
    TM = _choose_tm(M, K_pad, C_pad, shortcut is not None)
    M_pad = _round_up(M, TM)             # no tail block, no TM=M fallback

    patches_p = _pad2d(patches.astype(jnp.bfloat16), M_pad, K_pad)
    w_p = _pad2d(w2d.astype(jnp.bfloat16), K_pad, C_pad)
    bias_p = jnp.pad(bias.astype(jnp.float32), (0, C_pad - Cout)).reshape(1, C_pad)

    in_specs = [
        pl.BlockSpec((TM, K_pad), lambda i: (i, 0)),     # streamed patch tiles
        pl.BlockSpec((K_pad, C_pad), lambda i: (0, 0)),  # resident weight
        pl.BlockSpec((1, C_pad), lambda i: (0, 0)),      # resident bias
    ]
    args = [patches_p, w_p, bias_p]
    if shortcut is not None:
        short_p = _pad2d(shortcut.astype(jnp.bfloat16), M_pad, C_pad)
        in_specs.append(pl.BlockSpec((TM, C_pad), lambda i: (i, 0)))
        args.append(short_p)

    kernel = _make_kernel(apply_relu=relu, add_shortcut=shortcut is not None)

    out_p = pl.pallas_call(
        kernel,
        out_shape=jax.ShapeDtypeStruct((M_pad, C_pad), out_dtype),
        grid=(M_pad // TM,),
        in_specs=in_specs,
        out_specs=pl.BlockSpec((TM, C_pad), lambda i: (i, 0)),
        compiler_params=pltpu.CompilerParams(
            dimension_semantics=("parallel",),
            vmem_limit_bytes=64 * 1024 * 1024,
        ),
    )(*args)
    return out_p[:M, :Cout]


# ---------------------------------------------------------------------------
# Glue: im2col patch extraction, weight reshaping, BN folding (plain JAX)
# ---------------------------------------------------------------------------
def im2col(x_nhwc, ksize, stride, pad):
    N, H, W, C = x_nhwc.shape
    Ho = (H + 2 * pad - ksize) // stride + 1
    Wo = (W + 2 * pad - ksize) // stride + 1
    xp = jnp.pad(x_nhwc, ((0, 0), (pad, pad), (pad, pad), (0, 0)))
    cols = []
    for kh in range(ksize):
        for kw in range(ksize):
            sl = jax.lax.slice(
                xp,
                (0, kh, kw, 0),
                (N, kh + (Ho - 1) * stride + 1, kw + (Wo - 1) * stride + 1, C),
                (1, stride, stride, 1),
            )
            cols.append(sl)  # (N, Ho, Wo, C)
    patches = jnp.concatenate(cols, axis=-1)  # (N, Ho, Wo, ksize*ksize*C)
    return patches.reshape(N * Ho * Wo, ksize * ksize * C), (N, Ho, Wo)


def weight_oihw_to_2d(w_oihw):
    # (Cout, Cin, kh, kw) -> (kh*kw*Cin, Cout), matching im2col (kh, kw, cin) order
    kh, kw = w_oihw.shape[2], w_oihw.shape[3]
    return jnp.transpose(w_oihw, (2, 3, 1, 0)).reshape(kh * kw * w_oihw.shape[1],
                                                       w_oihw.shape[0])


def fold_bn(gamma, beta, mean, var, eps=1e-5):
    scale = gamma / jnp.sqrt(var + eps)
    bias = beta - mean * scale
    return scale, bias


def basic_block_forward(x_nchw, params, stride):
    """BasicBlock.forward. x_nchw: (N, Cin, H, W) float32."""
    x = jnp.transpose(x_nchw, (0, 2, 3, 1)).astype(jnp.bfloat16)  # NCHW -> NHWC, bf16
    Cin = x.shape[-1]
    Cout = params["w1"].shape[0]

    # conv1: 3x3, stride, pad=1, BN, ReLU  (BN scale folded into the weight)
    p1, (N, Ho, Wo) = im2col(x, 3, stride, 1)
    s1, b1 = fold_bn(*params["bn1"])
    w1 = weight_oihw_to_2d(params["w1"]) * s1[None, :]
    y1 = conv_bn_matmul(p1, w1, b1, relu=True, out_dtype=jnp.bfloat16)
    y1_nhwc = y1.reshape(N, Ho, Wo, Cout)

    # shortcut: 1x1-conv + BN when channel counts differ (as in the module),
    # otherwise identity (only valid with stride == 1, same as PyTorch).
    if Cin != Cout:
        ps, _ = im2col(x, 1, stride, 0)
        ss, bs = fold_bn(*params["bns"])
        ws = weight_oihw_to_2d(params["ws"]) * ss[None, :]
        sc = conv_bn_matmul(ps, ws, bs, relu=False, out_dtype=jnp.bfloat16)
    else:
        assert stride == 1, "identity shortcut requires stride == 1 (as in PyTorch)"
        sc = x.reshape(N * Ho * Wo, Cout)

    # conv2: 3x3, stride 1, pad=1, BN, + shortcut, ReLU (fused in one kernel)
    p2, _ = im2col(y1_nhwc, 3, 1, 1)
    s2, b2 = fold_bn(*params["bn2"])
    w2 = weight_oihw_to_2d(params["w2"]) * s2[None, :]
    out = conv_bn_matmul(p2, w2, b2, shortcut=sc, relu=True,
                         out_dtype=jnp.float32)
    out_nhwc = out.reshape(N, Ho, Wo, Cout)
    return jnp.transpose(out_nhwc, (0, 3, 1, 2))  # NHWC -> NCHW


# ---------------------------------------------------------------------------
# Pure-JAX f32 reference (for correctness check)
# ---------------------------------------------------------------------------
def _ref_conv_bn(x_nhwc, w_oihw, bn, stride, pad, relu):
    y = jax.lax.conv_general_dilated(
        x_nhwc, jnp.transpose(w_oihw, (2, 3, 1, 0)),
        window_strides=(stride, stride), padding=[(pad, pad), (pad, pad)],
        dimension_numbers=("NHWC", "HWIO", "NHWC"))
    scale, bias = fold_bn(*bn)
    y = y * scale + bias
    if relu:
        y = jnp.maximum(y, 0.0)
    return y


def ref_basic_block(x_nchw, params, stride):
    x = jnp.transpose(x_nchw, (0, 2, 3, 1))
    Cin = x.shape[-1]
    Cout = params["w1"].shape[0]
    y = _ref_conv_bn(x, params["w1"], params["bn1"], stride, 1, relu=True)
    y = _ref_conv_bn(y, params["w2"], params["bn2"], 1, 1, relu=False)
    if Cin != Cout:
        sc = _ref_conv_bn(x, params["ws"], params["bns"], stride, 0, relu=False)
    else:
        sc = x
    out = jnp.maximum(y + sc, 0.0)
    return jnp.transpose(out, (0, 3, 1, 2))


# ---------------------------------------------------------------------------
# Deterministic parameter init (shapes from BasicBlock.__init__)
# ---------------------------------------------------------------------------
def init_params(key, in_channels, out_channels):
    def msra(k, shape):  # c2_msra_fill: kaiming normal, mode="fan_out", relu
        fan_out = shape[0] * shape[2] * shape[3]
        return jax.random.normal(k, shape, jnp.float32) * jnp.sqrt(2.0 / fan_out)

    def bn(k, c):  # (gamma, beta, running_mean, running_var)
        k1, k2, k3, k4 = jax.random.split(k, 4)
        return (jax.random.uniform(k1, (c,), jnp.float32, 0.5, 1.5),
                jax.random.normal(k2, (c,), jnp.float32) * 0.1,
                jax.random.normal(k3, (c,), jnp.float32) * 0.1,
                jax.random.uniform(k4, (c,), jnp.float32, 0.5, 1.5))

    ks = jax.random.split(key, 6)
    return {
        "w1": msra(ks[0], (out_channels, in_channels, 3, 3)),
        "bn1": bn(ks[1], out_channels),
        "w2": msra(ks[2], (out_channels, out_channels, 3, 3)),
        "bn2": bn(ks[3], out_channels),
        "ws": msra(ks[4], (out_channels, in_channels, 1, 1)),
        "bns": bn(ks[5], out_channels),
    }


if __name__ == "__main__":
    key = jax.random.PRNGKey(0)

    # (N, Cin, H, W, Cout, stride):
    #   1) projection shortcut (Cin != Cout), stride 2  — primary small case
    #   2) identity shortcut (Cin == Cout), stride 1    — exercises M/K/C padding
    configs = [
        (2, 4, 16, 16, 8, 2),
        (2, 8, 12, 12, 8, 1),
    ]

    for (N, Cin, H, W, Cout, stride) in configs:
        key, kx, kp = jax.random.split(key, 3)
        x = jax.random.normal(kx, (N, Cin, H, W), jnp.float32)  # PyTorch NCHW input
        params = init_params(kp, Cin, Cout)

        out = jax.block_until_ready(basic_block_forward(x, params, stride))
        ref = jax.block_until_ready(ref_basic_block(x, params, stride))

        assert out.shape == (N, Cout, H // stride, W // stride), out.shape
        # Kernel runs the matmuls in bf16 (f32 accumulation); compare against the
        # f32 reference with a bf16-appropriate tolerance.
        err = float(jnp.max(jnp.abs(out - ref)))
        tol = 5e-2 * float(jnp.max(jnp.abs(ref))) + 5e-2
        assert err <= tol, (err, tol)

    print("KERNEL_OK")
</pallas_src>

<mosaic_0001>
module attributes {stable_mosaic.version = 11 : i64} {
  func.func @kernel(%arg0: i32, %arg1: memref<128x128xbf16, #tpu.memory_space<vmem>>, %arg2: memref<128x128xbf16, #tpu.memory_space<vmem>>, %arg3: memref<1x128xf32, #tpu.memory_space<vmem>>, %arg4: memref<128x128xbf16, #tpu.memory_space<vmem>>) attributes {dimension_semantics = [#tpu.dimension_semantics<parallel>], iteration_bounds = array<i64: 1>, scalar_prefetch = 0 : i64, scratch_operands = 0 : i64, tpu.core_type = #tpu.core_type<tc>, window_params = [{transform_indices = @transform_0, window_bounds = array<i64: 128, 128>}, {pipeline_mode = #tpu.pipeline_mode<synchronous>, transform_indices = @transform_1, window_bounds = array<i64: 128, 128>}, {pipeline_mode = #tpu.pipeline_mode<synchronous>, transform_indices = @transform_2, window_bounds = array<i64: 1, 128>}, {transform_indices = @transform_3, window_bounds = array<i64: 128, 128>}]} {
    %c0 = arith.constant 0 : index
    %c0_0 = arith.constant 0 : index
    %0 = vector.load %arg1[%c0, %c0_0] : memref<128x128xbf16, #tpu.memory_space<vmem>>, vector<128x128xbf16>
    %c0_1 = arith.constant 0 : index
    %c0_2 = arith.constant 0 : index
    %1 = vector.load %arg2[%c0_1, %c0_2] : memref<128x128xbf16, #tpu.memory_space<vmem>>, vector<128x128xbf16>
    %cst = arith.constant dense<0.000000e+00> : vector<128x128xf32>
    %2 = tpu.matmul %0, %1, %cst {dimension_numbers = #tpu.dot_dimension_numbers<[1], [0], [0], [1], [0, 0, 1, 1], [], []>} : vector<128x128xbf16>, vector<128x128xbf16>, vector<128x128xf32> -> vector<128x128xf32>
    %c0_3 = arith.constant 0 : index
    %c0_4 = arith.constant 0 : index
    %3 = vector.load %arg3[%c0_3, %c0_4] : memref<1x128xf32, #tpu.memory_space<vmem>>, vector<1x128xf32>
    %4 = vector.broadcast %3 : vector<1x128xf32> to vector<128x128xf32>
    %5 = arith.addf %2, %4 : vector<128x128xf32>
    %cst_5 = arith.constant 0.000000e+00 : f32
    %6 = vector.broadcast %cst_5 : f32 to vector<128x128xf32>
    %7 = arith.maximumf %5, %6 : vector<128x128xf32>
    %8 = arith.truncf %7 : vector<128x128xf32> to vector<128x128xbf16>
    %c0_6 = arith.constant 0 : index
    %c0_7 = arith.constant 0 : index
    %9 = vector.load %arg4[%c0_6, %c0_7] : memref<128x128xbf16, #tpu.memory_space<vmem>>, vector<128x128xbf16>
    tpu.vector_store %arg4[%c0_6, %c0_7], %8 {strides = array<i32>} : memref<128x128xbf16, #tpu.memory_space<vmem>>, vector<128x128xbf16>,
    return
  }
  func.func @transform_0(%arg0: i32) -> (i32, i32) {
    %c0_i32 = arith.constant 0 : i32
    %c0_i32_0 = arith.constant 0 : i32
    return %arg0, %c0_i32 : i32, i32
  }
  func.func @transform_1(%arg0: i32) -> (i32, i32) {
    %c0_i32 = arith.constant 0 : i32
    %c0_i32_0 = arith.constant 0 : i32
    %c0_i32_1 = arith.constant 0 : i32
    return %c0_i32, %c0_i32_0 : i32, i32
  }
  func.func @transform_2(%arg0: i32) -> (i32, i32) {
    %c0_i32 = arith.constant 0 : i32
    %c0_i32_0 = arith.constant 0 : i32
    %c0_i32_1 = arith.constant 0 : i32
    return %c0_i32, %c0_i32_0 : i32, i32
  }
  func.func @transform_3(%arg0: i32) -> (i32, i32) {
    %c0_i32 = arith.constant 0 : i32
    %c0_i32_0 = arith.constant 0 : i32
    return %arg0, %c0_i32 : i32, i32
  }
}

</mosaic_0001>

<bundles_post_ra>
// kernel: tpu_custom_call.1
= control target key start
LH: loop header
LB: loop body
LE: loop exit
PB: predicated region body
PF: predicated region fallthrough
CT: control target
= control target key end

     0   :  { %8 = vsyncpa [#allocation3], 0  ;;  %s767_s0 = inlined_call_operand.hbm [shape: bf16[128,128], index: 0, kind: input, shape index: {}]   ;;  %s768_s1 = inlined_call_operand.hbm [shape: bf16[128,128], index: 1, kind: input, shape index: {}]   ;;  %s769_s2 = inlined_call_operand.hbm [shape: f32[1,128], index: 2, kind: input, shape index: {}]   ;;  %s770_s3 = inlined_call_operand.hbm [shape: bf16[128,128], index: 3, kind: output, shape index: {}]  }
   0x1   :  { %9 = vsyncpa [#allocation6], 0 }
   0x2   :  { %10 = vsyncpa [#allocation4], 0  ;;  %s677_s12 = smov [#allocation5]   ;;  %s678_s14 = smov [#allocation2]  }
   0x3   :  { %s28_s13 = sshll.u32 %s677_s12, 4  ;;  %s16_s15 = sshll.u32 %s678_s14, 4  ;;  %s29_s13 = int_to_ptr.vmem [resolvable:$true] %s28_s13  ;;  %s703_s15 = int_to_ptr.vmem [resolvable:$true] %s16_s15 }
   0x4   :  { %s583_s18 = scalar_lea.hbm %s768_s1, 1024 }
   0x5   :  { %p584_p0 = scmp.ne.s32.totalorder %s768_s1, %s583_s18  ;;  %p587_p1 = scmp.lt.u32.totalorder %s583_s18, %s768_s1 }
   0x7   :  { %p589_p2 = pnand %p587_p1, %p584_p0 }
   0x9   :  { %592 = shalt.err (!%p589_p2)
}
   0xa   :  { %s593_s23 = scalar_lea.vmem %s29_s13, 1024  ;;  %p598_p4 = scmp.lt.s32.totalorder %s29_s13, %s29_s13 }
   0xb   :  { %p594_p3 = scmp.ne.s32.totalorder %s29_s13, %s593_s23  ;;  %p599_p5 = scmp.lt.s32.totalorder %s593_s23, %s593_s23 }
   0xd   :  { %p600_p6 = por %p599_p5, %p598_p4 }
   0xf   :  { %p601_p7 = pnand %p600_p6, %p594_p3 }
  0x11   :  { %604 = shalt.err (!%p601_p7)
}
  0x12   :  { %s679_s24 = smov 64   ;;  %s680_s25 = smov 4  }
  0x13   :  { %34 = dma.hbm_to_vmem [thread:$0]  %s768_s1, 1024, %s29_s13, [#allocation6], %s679_s24, %s679_s24, %s680_s25  }
  0x14   :  { %s605_s30 = scalar_lea.hbm %s767_s0, 1024 }
  0x15   :  { %p606_p8 = scmp.ne.s32.totalorder %s767_s0, %s605_s30  ;;  %p609_p9 = scmp.lt.u32.totalorder %s605_s30, %s767_s0 }
  0x17   :  { %p611_p10 = pnand %p609_p9, %p606_p8 }
  0x19   :  { %614 = shalt.err (!%p611_p10)
}
  0x1a   :  { %s615_s8 = scalar_lea.vmem %s703_s15, 1024  ;;  %p620_p12 = scmp.lt.s32.totalorder %s703_s15, %s703_s15 }
  0x1b   :  { %p616_p11 = scmp.ne.s32.totalorder %s703_s15, %s615_s8  ;;  %p621_p13 = scmp.lt.s32.totalorder %s615_s8, %s615_s8 }
  0x1d   :  { %p622_p0 = por %p621_p13, %p620_p12 }
  0x1f   :  { %p623_p1 = pnand %p622_p0, %p616_p11 }
  0x21   :  { %626 = shalt.err (!%p623_p1)
}
  0x22   :  { %22 = dma.hbm_to_vmem [thread:$0]  %s767_s0, 1024, %s703_s15, [#allocation3], %s679_s24, %s679_s24, %s680_s25  }
  0x23   :  { %s681_s10 = smov [#allocation7]   ;;  %s627_s14 = scalar_lea.hbm %s769_s2, 16 }
  0x24   :  { %s41_s11 = sshll.u32 %s681_s10, 4  ;;  %p628_p2 = scmp.ne.s32.totalorder %s769_s2, %s627_s14  ;;  %s42_s11 = int_to_ptr.vmem [resolvable:$true] %s41_s11 }
  0x25   :  { %p631_p3 = scmp.lt.u32.totalorder %s627_s14, %s769_s2 }
  0x27   :  { %p633_p4 = pnand %p631_p3, %p628_p2 }
  0x29   :  { %636 = shalt.err (!%p633_p4)
}
  0x2a   :  { %s637_s20 = scalar_lea.vmem %s42_s11, 16  ;;  %s641_s0 = scalar_lea.vmem %s42_s11, 32 }
  0x2b   :  { %p638_p5 = scmp.ne.s32.totalorder %s42_s11, %s637_s20  ;;  %p642_p6 = scmp.lt.s32.totalorder %s42_s11, %s42_s11 }
  0x2c   :  { %p643_p7 = scmp.lt.s32.totalorder %s641_s0, %s637_s20 }
  0x2e   :  { %p644_p8 = por %p643_p7, %p642_p6 }
  0x30   :  { %p645_p9 = pnand %p644_p8, %p638_p5 }
  0x32   :  { %648 = shalt.err (!%p645_p9)
}
  0x33   :  { %44 = dma.hbm_to_vmem [thread:$0]  %s769_s2, 16, %s42_s11, [#allocation6]  }
  0x34   :  { %671 = dma.done.wait [#allocation3], 1024  }
  0x35   :  { %672 = vsyncadd [#allocation3], 4294966272 }
  0x36   :  { %673 = dma.done.wait [#allocation6], 1040  }
  0x37   :  { %674 = vsyncadd [#allocation6], 4294966256  ;;  %v567_v0 = vld [vmem:[#allocation5] sm:$0xff]   ;;  %v568_v1 = vld [vmem:[#allocation5 + $0x8] sm:$0xff]   ;;  %s682_s2 = smov [#allocation8]  }
  0x38   :  { %513 = vmatprep.subr.bf16.mxu0 %v567_v0  ;;  %545 = vmatprep.subr.bf16.mxu1 %v567_v0  ;;  %v569_v2 = vld [vmem:[#allocation5 + $0x10] sm:$0xff]   ;;  %v570_v3 = vld [vmem:[#allocation5 + $0x18] sm:$0xff]   ;;  %v575_v4 = vld [vmem:[#allocation2] sm:$0xff]   ;;  %s388_s22 = sshll.u32 %s682_s2, 4  ;;  %s389_s22 = int_to_ptr.vmem [resolvable:$true] %s388_s22 }
  0x39   :  { %514 = vmatpush3.bf16.msra.mxu0 %v567_v0  ;;  %553 = vmatpush3.bf16.msra.mxu1 %v567_v0  ;;  %v576_v5 = vld [vmem:[#allocation2 + $0x20] sm:$0xff]   ;;  %v572_v7 = vld [vmem:[#allocation5 + $0x28] sm:$0xff]   ;;  %v573_v8 = vld [vmem:[#allocation5 + $0x30] sm:$0xff]   ;;  %s649_s23 = scalar_lea.vmem %s389_s22, 1024  ;;  %p654_p11 = scmp.lt.s32.totalorder %s389_s22, %s389_s22 }
  0x3a   :  { %515 = vmatprep.subr.bf16.mxu0 %v568_v1  ;;  %546 = vmatprep.subr.bf16.mxu1 %v568_v1  ;;  %v571_v6 = vld [vmem:[#allocation5 + $0x20] sm:$0xff]   ;;  %v574_v9 = vld [vmem:[#allocation5 + $0x38] sm:$0xff]   ;;  %v577_v10 = vld [vmem:[#allocation2 + $0x8] sm:$0xff]   ;;  %p650_p10 = scmp.ne.s32.totalorder %s389_s22, %s649_s23  ;;  %p655_p12 = scmp.lt.s32.totalorder %s649_s23, %s649_s23 }
  0x3b   :  { %529 = vmatprep.mubr.bf16.mxu0 %v575_v4  ;;  %537 = vmatprep.mubr.bf16.mxu1 %v576_v5  ;;  %v578_v11 = vld [vmem:[#allocation2 + $0x28] sm:$0xff]   ;;  %v579_v12 = vld [vmem:[#allocation2 + $0x10] sm:$0xff]   ;;  %v581_v14 = vld [vmem:[#allocation2 + $0x18] sm:$0xff]  }
  0x3c   :  { %v580_v13 = vld [vmem:[#allocation2 + $0x30] sm:$0xff]   ;;  %v582_v15 = vld [vmem:[#allocation2 + $0x38] sm:$0xff]   ;;  %v401_v16 = vld [vmem:[#allocation7] ss:$0 sm:$0xff]  ;;  %p656_p13 = por %p655_p12, %p654_p11 }
  0x3d   :  { %516 = vmatpush3.bf16.msra.mxu0 %v568_v1  ;;  %554 = vmatpush3.bf16.msra.mxu1 %v568_v1 }
  0x3e   :  { %517 = vmatprep.subr.bf16.mxu0 %v569_v2  ;;  %547 = vmatprep.subr.bf16.mxu1 %v569_v2  ;;  %p657_p0 = pnand %p656_p13, %p650_p10 }
  0x41   :  { %518 = vmatpush3.bf16.msra.mxu0 %v569_v2  ;;  %555 = vmatpush3.bf16.msra.mxu1 %v569_v2 }
  0x42   :  { %519 = vmatprep.subr.bf16.mxu0 %v570_v3  ;;  %548 = vmatprep.subr.bf16.mxu1 %v570_v3 }
  0x45   :  { %520 = vmatpush3.bf16.msra.mxu0 %v570_v3  ;;  %556 = vmatpush3.bf16.msra.mxu1 %v570_v3 }
  0x46   :  { %521 = vmatprep.subr.bf16.mxu0 %v571_v6  ;;  %549 = vmatprep.subr.bf16.mxu1 %v571_v6 }
  0x49   :  { %522 = vmatpush3.bf16.msra.mxu0 %v571_v6  ;;  %557 = vmatpush3.bf16.msra.mxu1 %v571_v6 }
  0x4a   :  { %523 = vmatprep.subr.bf16.mxu0 %v572_v7  ;;  %550 = vmatprep.subr.bf16.mxu1 %v572_v7 }
  0x4d   :  { %524 = vmatpush3.bf16.msra.mxu0 %v572_v7  ;;  %558 = vmatpush3.bf16.msra.mxu1 %v572_v7 }
  0x4e   :  { %525 = vmatprep.subr.bf16.mxu0 %v573_v8  ;;  %551 = vmatprep.subr.bf16.mxu1 %v573_v8 }
  0x51   :  { %526 = vmatpush3.bf16.msra.mxu0 %v573_v8  ;;  %559 = vmatpush3.bf16.msra.mxu1 %v573_v8 }
  0x52   :  { %527 = vmatprep.subr.bf16.mxu0 %v574_v9  ;;  %552 = vmatprep.subr.bf16.mxu1 %v574_v9 }
  0x55   :  { %528 = vmatpush3.bf16.msra.mxu0 %v574_v9  ;;  %560 = vmatpush3.bf16.msra.mxu1 %v574_v9 }
  0x58   :  { %530 = vmatmul.mubr.bf16.vlgmr.msra.gmra.mrb[0].mxu0 %v577_v10  ;;  %538 = vmatmul.mubr.bf16.vlgmr.msra.gmra.mrb[0].mxu1 %v578_v11 }
  0x59   :  { %533 = vmatprep.mubr.bf16.mxu0 %v579_v12  ;;  %541 = vmatprep.mubr.bf16.mxu1 %v580_v13 }
  0x60   :  { %534 = vmatmul.mubr.bf16.gmra.mrb[4].mxu0 %v581_v14  ;;  %542 = vmatmul.mubr.bf16.gmra.mrb[4].mxu1 %v582_v15 }
 0x12b   :  { %v531_v17 = vpop.f32.mrb[0].mxu0  ;;  %v539_v18 = vpop.f32.mrb[0].mxu1 }
 0x12c   :  { %v233_v19 = vadd.f32 %v531_v17, %v401_v16  ;;  %v265_v20 = vadd.f32 %v539_v18, %v401_v16  ;;  %v224_v21 = vpop.f32.mrb[1].mxu0  ;;  %v256_v22 = vpop.f32.mrb[1].mxu1 }
 0x12d   :  { %v225_v23 = vadd.f32 %v401_v16, %v224_v21  ;;  %v257_v24 = vadd.f32 %v401_v16, %v256_v22  ;;  %v532_v25 = vpop.f32.mrb[2].mxu0  ;;  %v540_v26 = vpop.f32.mrb[2].mxu1 }
 0x12e   :  { %v236_v27 = vadd.f32 %v532_v25, %v401_v16  ;;  %v268_v28 = vadd.f32 %v540_v26, %v401_v16  ;;  %v227_v29 = vpop.f32.mrb[3].mxu0  ;;  %v259_v30 = vpop.f32.mrb[3].mxu1  ;;  %v289_v33 = vmax.f32 %v233_v19, 0.0  ;;  %v297_v34 = vmax.f32 %v265_v20, 0.0 }
 0x12f   :  { %v228_v31 = vadd.f32 %v401_v16, %v227_v29  ;;  %v260_v32 = vadd.f32 %v401_v16, %v259_v30  ;;  %v287_v37 = vmax.f32 %v225_v23, 0.0  ;;  %v295_v38 = vmax.f32 %v257_v24, 0.0 }
 0x130   :  { %v290_v35 = vmax.f32 %v236_v27, 0.0  ;;  %v298_v36 = vmax.f32 %v268_v28, 0.0 }
 0x131   :  { %v288_v39 = vmax.f32 %v228_v31, 0.0  ;;  %v296_v40 = vmax.f32 %v260_v32, 0.0 }
 0x132   :  { %v458_v41 = vpack.c.bf16 %v290_v35, %v289_v33  ;;  %v478_v42 = vpack.c.bf16 %v298_v36, %v297_v34 }
 0x133   :  { %v453_v43 = vpack.c.bf16 %v288_v39, %v287_v37  ;;  %v473_v44 = vpack.c.bf16 %v296_v40, %v295_v38  ;;  %v535_v45 = vpop.f32.mrb[4].mxu0  ;;  %v543_v46 = vpop.f32.mrb[4].mxu1 }
 0x134   :  { %490 = vst [vmem:[#allocation8 + $0x8] sm:$0xff] %v458_v41   ;;  %494 = vst [vmem:[#allocation8 + $0x28] sm:$0xff] %v478_v42   ;;  %v249_v47 = vadd.f32 %v535_v45, %v401_v16  ;;  %v281_v48 = vadd.f32 %v543_v46, %v401_v16  ;;  %v240_v49 = vpop.f32.mrb[5].mxu0  ;;  %v272_v50 = vpop.f32.mrb[5].mxu1 }
 0x135   :  { %454 = vst [vmem:[#allocation8] sm:$0xff] %v453_v43   ;;  %493 = vst [vmem:[#allocation8 + $0x20] sm:$0xff] %v473_v44   ;;  %v241_v51 = vadd.f32 %v401_v16, %v240_v49  ;;  %v273_v52 = vadd.f32 %v401_v16, %v272_v50  ;;  %v536_v53 = vpop.f32.mrb[6].mxu0  ;;  %v544_v54 = vpop.f32.mrb[6].mxu1 }
 0x136   :  { %v252_v55 = vadd.f32 %v536_v53, %v401_v16  ;;  %v284_v56 = vadd.f32 %v544_v54, %v401_v16  ;;  %v243_v57 = vpop.f32.mrb[7].mxu0  ;;  %v275_v58 = vpop.f32.mrb[7].mxu1  ;;  %v293_v61 = vmax.f32 %v249_v47, 0.0  ;;  %v301_v62 = vmax.f32 %v281_v48, 0.0 }
 0x137   :  { %v244_v59 = vadd.f32 %v401_v16, %v243_v57  ;;  %v276_v60 = vadd.f32 %v401_v16, %v275_v58  ;;  %v291_v1 = vmax.f32 %v241_v51, 0.0  ;;  %v299_v2 = vmax.f32 %v273_v52, 0.0 }
 0x138   :  { %v294_v63 = vmax.f32 %v252_v55, 0.0  ;;  %v302_v0 = vmax.f32 %v284_v56, 0.0 }
 0x139   :  { %v292_v3 = vmax.f32 %v244_v59, 0.0  ;;  %v300_v4 = vmax.f32 %v276_v60, 0.0 }
 0x13a   :  { %v468_v5 = vpack.c.bf16 %v294_v63, %v293_v61  ;;  %v488_v6 = vpack.c.bf16 %v302_v0, %v301_v62 }
 0x13b   :  { %v463_v7 = vpack.c.bf16 %v292_v3, %v291_v1  ;;  %v483_v8 = vpack.c.bf16 %v300_v4, %v299_v2 }
 0x13c   :  { %492 = vst [vmem:[#allocation8 + $0x18] sm:$0xff] %v468_v5   ;;  %496 = vst [vmem:[#allocation8 + $0x38] sm:$0xff] %v488_v6  }
 0x13d   :  { %491 = vst [vmem:[#allocation8 + $0x10] sm:$0xff] %v463_v7   ;;  %495 = vst [vmem:[#allocation8 + $0x30] sm:$0xff] %v483_v8  }
 0x13e   :  { %660 = shalt.err (!%p657_p0)
}
 0x13f   :  { %s661_s28 = scalar_lea.hbm %s770_s3, 1024 }
 0x140   :  { %p662_p1 = scmp.ne.s32.totalorder %s770_s3, %s661_s28  ;;  %p665_p2 = scmp.lt.u32.totalorder %s661_s28, %s770_s3 }
 0x142   :  { %p667_p3 = pnand %p665_p2, %p662_p1 }
 0x144   :  { %670 = shalt.err (!%p667_p3)
}
 0x145   :  { %394 = dma.vmem_to_hbm [thread:$0]  %s389_s22, 1024, %s770_s3, [#allocation4], %s679_s24, %s679_s24, %s680_s25  }
 0x146   :  { %675 = dma.done.wait [#allocation4], 1024  }
 0x147   :  { %676 = vsyncadd [#allocation4], 4294966272 }
 0x148   :  { %398 = vsyncpa [#allocation3], 1 }
 0x149   :  { %399 = vsyncpa [#allocation6], 1 }
 0x14a   :  { %400 = vsyncpa [#allocation4], 1 }

</bundles_post_ra>
